<compile_context>
chip_gen: v5e
topology: v5e:2x2
jax: 0.10.0
libtpu: 0.0.40
codegen_flags: <defaults>
</compile_context>

<pallas_src>
import math

import jax
import jax.numpy as jnp
from jax import lax
from jax.experimental import pallas as pl
from jax.experimental.pallas import tpu as pltpu

KW = 9          # temporal kernel width
PAD = 4         # (KW - 1) // 2, "same" padding along W
BN_EPS = 1e-5


def _s1_block_kernel(x_ref, w0_ref, w1_ref, s0_ref, b0_ref, s1_ref, b1_ref,
                     mask_ref, o_ref):
    """x_ref/o_ref: (C, L) f32 with L = TM * Wp (zero-padded rows flattened on lanes).
    w*_ref: (C, KW*C) bf16 with w[co, k*C + ci] = conv_w[co, ci, 0, k].
    s*/b*_ref: (C, 1) f32 folded BN scale / bias.
    mask_ref: (1, L) f32, 1.0 on interior (valid-time) lanes, 0.0 on pad lanes."""
    L = x_ref.shape[1]

    def conv1x9(act, w_ref):
        # tap k needs act[:, f + (k - PAD)]: shift along the lane axis via the XLU
        # (no sublane-unaligned slices).  Interior output lanes never cross rows.
        taps = [act if k == PAD else pltpu.roll(act, shift=(PAD - k) % L, axis=1)
                for k in range(KW)]
        stack = jnp.concatenate(taps, axis=0).astype(jnp.bfloat16)   # (KW*C, L)
        # single bf16 MXU matmul per conv, f32 accumulation
        return lax.dot_general(w_ref[...], stack,
                               dimension_numbers=(((1,), (0,)), ((), ())),
                               preferred_element_type=jnp.float32)   # (C, L) f32

    # conv0 -> bn0 -> relu; re-zero the pad lanes so conv1 sees correct zero padding
    h = conv1x9(x_ref[...], w0_ref)
    h = jnp.maximum(h * s0_ref[...] + b0_ref[...], 0.0) * mask_ref[...]

    # conv1 -> bn1 -> residual -> relu (x re-read here; pad lanes discarded by wrapper)
    out = conv1x9(h, w1_ref)
    out = jnp.maximum(out * s1_ref[...] + b1_ref[...] + x_ref[...], 0.0)
    o_ref[...] = out.astype(o_ref.dtype)


def _choose_block_rows(M, wp, C):
    """Rows (of padded length wp) per grid block.

    Start from the smallest row count that makes the lane dimension (rows * wp)
    a multiple of 128 (lane-dense, unmasked stores) and grow it while the
    per-block working set stays well inside every generation's scoped-VMEM
    budget (v5e 16 MiB default, v6e/v7x 32 MiB default, v7x 64 MiB physical)."""
    lane_tm = 128 // math.gcd(wp, 128)

    def block_bytes(tm):
        L = tm * wp
        io = 2 * 2 * C * L * 4                     # x + out blocks, double-buffered, f32
        stack = (2 * 4 + 2) * KW * C * L           # rolled taps + f32 concat + bf16 stack
        interm = 4 * C * L * 4                     # h / accumulators / headroom
        return io + stack + interm

    budget = 8 * 1024 * 1024
    m_cap = pl.cdiv(M, lane_tm) * lane_tm          # no point exceeding (padded) M
    tm = lane_tm
    while tm * 2 <= min(m_cap, 2048) and block_bytes(tm * 2) <= budget:
        tm *= 2
    return tm


def s1_block_pallas(x_nchw, w0, w1, scale0, bias0, scale1, bias1):
    """x_nchw: (N, C, H, W). w0/w1: torch layout (C_out, C_in, 1, KW), no bias.
    scale*/bias*: (C,) folded BatchNorm parameters. Returns (N, C, H, W)."""
    N, C, H, W = x_nchw.shape
    M = N * H
    wp = W + 2 * PAD

    # NCHW -> channels-on-sublanes / time-on-lanes: (C, M, Wp), zero padded along time
    x_cmw = jnp.transpose(x_nchw, (1, 0, 2, 3)).reshape(C, M, W)
    xp = jnp.pad(x_cmw, ((0, 0), (0, 0), (PAD, PAD)))

    tm = _choose_block_rows(M, wp, C)
    mp = pl.cdiv(M, tm) * tm                       # pad rows so the grid divides evenly
    if mp != M:
        xp = jnp.pad(xp, ((0, 0), (0, mp - M), (0, 0)))
    l_blk = tm * wp                                # lane dim per block (multiple of 128)
    xp_flat = xp.reshape(C, mp * wp).astype(jnp.float32)

    # torch (co, ci, 1, k) -> (co, k*C + ci); bf16 MXU operands (f32 accumulation in-kernel)
    w0_mat = jnp.transpose(w0[:, :, 0, :], (0, 2, 1)).reshape(C, KW * C).astype(jnp.bfloat16)
    w1_mat = jnp.transpose(w1[:, :, 0, :], (0, 2, 1)).reshape(C, KW * C).astype(jnp.bfloat16)

    s0 = scale0.reshape(C, 1).astype(jnp.float32)
    b0 = bias0.reshape(C, 1).astype(jnp.float32)
    s1 = scale1.reshape(C, 1).astype(jnp.float32)
    b1 = bias1.reshape(C, 1).astype(jnp.float32)

    # interior-lane mask for one block (identical for every block: whole rows per block)
    pos = jnp.arange(l_blk, dtype=jnp.int32) % wp
    mask = ((pos >= PAD) & (pos < PAD + W)).astype(jnp.float32).reshape(1, l_blk)

    row_spec = pl.BlockSpec((C, l_blk), lambda i: (0, i))
    const = lambda i: (0, 0)

    out_flat = pl.pallas_call(
        _s1_block_kernel,
        out_shape=jax.ShapeDtypeStruct((C, mp * wp), x_nchw.dtype),
        grid_spec=pltpu.PrefetchScalarGridSpec(
            num_scalar_prefetch=0,
            grid=(mp // tm,),
            in_specs=[
                row_spec,                                   # x, tiled over row blocks
                pl.BlockSpec((C, KW * C), const),           # w0 (VMEM resident)
                pl.BlockSpec((C, KW * C), const),           # w1
                pl.BlockSpec((C, 1), const),                # s0
                pl.BlockSpec((C, 1), const),                # b0
                pl.BlockSpec((C, 1), const),                # s1
                pl.BlockSpec((C, 1), const),                # b1
                pl.BlockSpec((1, l_blk), const),            # interior-lane mask
            ],
            out_specs=row_spec,
        ),
        compiler_params=pltpu.CompilerParams(
            dimension_semantics=("parallel",),              # megacore: 2 TCs on v7x
            vmem_limit_bytes=32 * 1024 * 1024,
        ),
    )(xp_flat, w0_mat, w1_mat, s0, b0, s1, b1, mask)

    # (C, Mp*Wp) -> (N, C, H, W): drop the row padding and the time pads
    out = out_flat.reshape(C, mp, wp)[:, :M, PAD:PAD + W]
    return jnp.transpose(out.reshape(C, N, H, W), (1, 0, 2, 3))


def _fold_bn(gamma, beta, running_mean, running_var, eps=BN_EPS):
    scale = gamma / jnp.sqrt(running_var + eps)
    bias = beta - running_mean * scale
    return scale, bias


def _reference_forward(x, w0, w1, s0, b0, s1, b1):
    """Pure-JAX reference matching the PyTorch NCHW semantics (BN in eval mode)."""
    dn = ('NCHW', 'OIHW', 'NCHW')
    y = lax.conv_general_dilated(x, w0, (1, 1), ((0, 0), (PAD, PAD)),
                                 dimension_numbers=dn)
    y = y * s0.reshape(1, -1, 1, 1) + b0.reshape(1, -1, 1, 1)
    y = jnp.maximum(y, 0.0)
    y = lax.conv_general_dilated(y, w1, (1, 1), ((0, 0), (PAD, PAD)),
                                 dimension_numbers=dn)
    y = y * s1.reshape(1, -1, 1, 1) + b1.reshape(1, -1, 1, 1)
    return jnp.maximum(y + x, 0.0)


if __name__ == "__main__":
    # Small deterministic setup:  N=2, out_ch=8, H=4 (freq), W=16 (time)
    N, C, H, W = 2, 8, 4, 16
    key = jax.random.PRNGKey(0)
    kx, kw0, kw1, kg0, kb0, km0, kv0, kg1, kb1, km1, kv1 = jax.random.split(key, 11)

    x = jax.random.normal(kx, (N, C, H, W), dtype=jnp.float32)

    # Conv weights (torch layout: out_ch, in_ch, 1, 9), no bias.
    w0 = 0.1 * jax.random.normal(kw0, (C, C, 1, KW), dtype=jnp.float32)
    w1 = 0.1 * jax.random.normal(kw1, (C, C, 1, KW), dtype=jnp.float32)

    # BatchNorm parameters (affine=True), inference-mode running stats.
    # TODO(synk): training-mode BN (batch statistics + running-stat updates) is not
    #             implemented; stats are folded into per-channel scale/bias.
    gamma0 = 1.0 + 0.1 * jax.random.normal(kg0, (C,), dtype=jnp.float32)
    beta0 = 0.1 * jax.random.normal(kb0, (C,), dtype=jnp.float32)
    mean0 = 0.1 * jax.random.normal(km0, (C,), dtype=jnp.float32)
    var0 = 1.0 + 0.1 * jnp.abs(jax.random.normal(kv0, (C,), dtype=jnp.float32))
    gamma1 = 1.0 + 0.1 * jax.random.normal(kg1, (C,), dtype=jnp.float32)
    beta1 = 0.1 * jax.random.normal(kb1, (C,), dtype=jnp.float32)
    mean1 = 0.1 * jax.random.normal(km1, (C,), dtype=jnp.float32)
    var1 = 1.0 + 0.1 * jnp.abs(jax.random.normal(kv1, (C,), dtype=jnp.float32))

    s0, b0 = _fold_bn(gamma0, beta0, mean0, var0)
    s1, b1 = _fold_bn(gamma1, beta1, mean1, var1)

    out = s1_block_pallas(x, w0, w1, s0, b0, s1, b1)
    out = jax.block_until_ready(out)

    ref = jax.block_until_ready(_reference_forward(x, w0, w1, s0, b0, s1, b1))
    assert out.shape == (N, C, H, W)
    # bf16 MXU operands (f32 accumulation) -> slightly looser tolerance than pure f32.
    assert jnp.allclose(out, ref, rtol=5e-2, atol=5e-2), (
        float(jnp.max(jnp.abs(out - ref))))

    print("KERNEL_OK")
</pallas_src>

<mosaic_0001>
module attributes {stable_mosaic.version = 11 : i64} {
  func.func @_s1_block_kernel(%arg0: i32, %arg1: memref<8x384xf32, #tpu.memory_space<vmem>>, %arg2: memref<8x72xbf16, #tpu.memory_space<vmem>>, %arg3: memref<8x72xbf16, #tpu.memory_space<vmem>>, %arg4: memref<8x1xf32, #tpu.memory_space<vmem>>, %arg5: memref<8x1xf32, #tpu.memory_space<vmem>>, %arg6: memref<8x1xf32, #tpu.memory_space<vmem>>, %arg7: memref<8x1xf32, #tpu.memory_space<vmem>>, %arg8: memref<1x384xf32, #tpu.memory_space<vmem>>, %arg9: memref<8x384xf32, #tpu.memory_space<vmem>>) attributes {dimension_semantics = [#tpu.dimension_semantics<parallel>], iteration_bounds = array<i64: 1>, scalar_prefetch = 0 : i64, scratch_operands = 0 : i64, tpu.core_type = #tpu.core_type<tc>, window_params = [{transform_indices = @transform_0, window_bounds = array<i64: 8, 384>}, {pipeline_mode = #tpu.pipeline_mode<synchronous>, transform_indices = @transform_1, window_bounds = array<i64: 8, 72>}, {pipeline_mode = #tpu.pipeline_mode<synchronous>, transform_indices = @transform_2, window_bounds = array<i64: 8, 72>}, {pipeline_mode = #tpu.pipeline_mode<synchronous>, transform_indices = @transform_3, window_bounds = array<i64: 8, 1>}, {pipeline_mode = #tpu.pipeline_mode<synchronous>, transform_indices = @transform_4, window_bounds = array<i64: 8, 1>}, {pipeline_mode = #tpu.pipeline_mode<synchronous>, transform_indices = @transform_5, window_bounds = array<i64: 8, 1>}, {pipeline_mode = #tpu.pipeline_mode<synchronous>, transform_indices = @transform_6, window_bounds = array<i64: 8, 1>}, {pipeline_mode = #tpu.pipeline_mode<synchronous>, transform_indices = @transform_7, window_bounds = array<i64: 1, 384>}, {transform_indices = @transform_8, window_bounds = array<i64: 8, 384>}]} {
    %c0 = arith.constant 0 : index
    %c0_0 = arith.constant 0 : index
    %0 = vector.load %arg1[%c0, %c0_0] : memref<8x384xf32, #tpu.memory_space<vmem>>, vector<8x384xf32>
    %c4_i32 = arith.constant 4 : i32
    %1 = tpu.dynamic_rotate %0 by %c4_i32 dim 1 : vector<8x384xf32>, i32 -> vector<8x384xf32>
    %c3_i32 = arith.constant 3 : i32
    %2 = tpu.dynamic_rotate %0 by %c3_i32 dim 1 : vector<8x384xf32>, i32 -> vector<8x384xf32>
    %c2_i32 = arith.constant 2 : i32
    %3 = tpu.dynamic_rotate %0 by %c2_i32 dim 1 : vector<8x384xf32>, i32 -> vector<8x384xf32>
    %c1_i32 = arith.constant 1 : i32
    %4 = tpu.dynamic_rotate %0 by %c1_i32 dim 1 : vector<8x384xf32>, i32 -> vector<8x384xf32>
    %c383_i32 = arith.constant 383 : i32
    %5 = tpu.dynamic_rotate %0 by %c383_i32 dim 1 : vector<8x384xf32>, i32 -> vector<8x384xf32>
    %c382_i32 = arith.constant 382 : i32
    %6 = tpu.dynamic_rotate %0 by %c382_i32 dim 1 : vector<8x384xf32>, i32 -> vector<8x384xf32>
    %c381_i32 = arith.constant 381 : i32
    %7 = tpu.dynamic_rotate %0 by %c381_i32 dim 1 : vector<8x384xf32>, i32 -> vector<8x384xf32>
    %c380_i32 = arith.constant 380 : i32
    %8 = tpu.dynamic_rotate %0 by %c380_i32 dim 1 : vector<8x384xf32>, i32 -> vector<8x384xf32>
    %9 = tpu.concatenate %1, %2, %3, %4, %0, %5, %6, %7, %8 in 0 : vector<8x384xf32>, vector<8x384xf32>, vector<8x384xf32>, vector<8x384xf32>, vector<8x384xf32>, vector<8x384xf32>, vector<8x384xf32>, vector<8x384xf32>, vector<8x384xf32> -> vector<72x384xf32>
    %10 = arith.truncf %9 : vector<72x384xf32> to vector<72x384xbf16>
    %c0_1 = arith.constant 0 : index
    %c0_2 = arith.constant 0 : index
    %11 = vector.load %arg2[%c0_1, %c0_2] : memref<8x72xbf16, #tpu.memory_space<vmem>>, vector<8x72xbf16>
    %cst = arith.constant dense<0.000000e+00> : vector<8x384xf32>
    %12 = tpu.matmul %11, %10, %cst {dimension_numbers = #tpu.dot_dimension_numbers<[1], [0], [0], [1], [0, 0, 1, 1], [], []>} : vector<8x72xbf16>, vector<72x384xbf16>, vector<8x384xf32> -> vector<8x384xf32>
    %c0_3 = arith.constant 0 : index
    %c0_4 = arith.constant 0 : index
    %13 = vector.load %arg4[%c0_3, %c0_4] : memref<8x1xf32, #tpu.memory_space<vmem>>, vector<8x1xf32>
    %14 = vector.broadcast %13 : vector<8x1xf32> to vector<8x384xf32>
    %15 = arith.mulf %12, %14 : vector<8x384xf32>
    %c0_5 = arith.constant 0 : index
    %c0_6 = arith.constant 0 : index
    %16 = vector.load %arg5[%c0_5, %c0_6] : memref<8x1xf32, #tpu.memory_space<vmem>>, vector<8x1xf32>
    %17 = vector.broadcast %16 : vector<8x1xf32> to vector<8x384xf32>
    %18 = arith.addf %15, %17 : vector<8x384xf32>
    %cst_7 = arith.constant 0.000000e+00 : f32
    %19 = vector.broadcast %cst_7 : f32 to vector<8x384xf32>
    %20 = arith.maximumf %18, %19 : vector<8x384xf32>
    %c0_8 = arith.constant 0 : index
    %c0_9 = arith.constant 0 : index
    %21 = vector.load %arg8[%c0_8, %c0_9] : memref<1x384xf32, #tpu.memory_space<vmem>>, vector<1x384xf32>
    %22 = vector.broadcast %21 : vector<1x384xf32> to vector<8x384xf32>
    %23 = arith.mulf %20, %22 : vector<8x384xf32>
    %c4_i32_10 = arith.constant 4 : i32
    %24 = tpu.dynamic_rotate %23 by %c4_i32_10 dim 1 : vector<8x384xf32>, i32 -> vector<8x384xf32>
    %c3_i32_11 = arith.constant 3 : i32
    %25 = tpu.dynamic_rotate %23 by %c3_i32_11 dim 1 : vector<8x384xf32>, i32 -> vector<8x384xf32>
    %c2_i32_12 = arith.constant 2 : i32
    %26 = tpu.dynamic_rotate %23 by %c2_i32_12 dim 1 : vector<8x384xf32>, i32 -> vector<8x384xf32>
    %c1_i32_13 = arith.constant 1 : i32
    %27 = tpu.dynamic_rotate %23 by %c1_i32_13 dim 1 : vector<8x384xf32>, i32 -> vector<8x384xf32>
    %c383_i32_14 = arith.constant 383 : i32
    %28 = tpu.dynamic_rotate %23 by %c383_i32_14 dim 1 : vector<8x384xf32>, i32 -> vector<8x384xf32>
    %c382_i32_15 = arith.constant 382 : i32
    %29 = tpu.dynamic_rotate %23 by %c382_i32_15 dim 1 : vector<8x384xf32>, i32 -> vector<8x384xf32>
    %c381_i32_16 = arith.constant 381 : i32
    %30 = tpu.dynamic_rotate %23 by %c381_i32_16 dim 1 : vector<8x384xf32>, i32 -> vector<8x384xf32>
    %c380_i32_17 = arith.constant 380 : i32
    %31 = tpu.dynamic_rotate %23 by %c380_i32_17 dim 1 : vector<8x384xf32>, i32 -> vector<8x384xf32>
    %32 = tpu.concatenate %24, %25, %26, %27, %23, %28, %29, %30, %31 in 0 : vector<8x384xf32>, vector<8x384xf32>, vector<8x384xf32>, vector<8x384xf32>, vector<8x384xf32>, vector<8x384xf32>, vector<8x384xf32>, vector<8x384xf32>, vector<8x384xf32> -> vector<72x384xf32>
    %33 = arith.truncf %32 : vector<72x384xf32> to vector<72x384xbf16>
    %c0_18 = arith.constant 0 : index
    %c0_19 = arith.constant 0 : index
    %34 = vector.load %arg3[%c0_18, %c0_19] : memref<8x72xbf16, #tpu.memory_space<vmem>>, vector<8x72xbf16>
    %cst_20 = arith.constant dense<0.000000e+00> : vector<8x384xf32>
    %35 = tpu.matmul %34, %33, %cst_20 {dimension_numbers = #tpu.dot_dimension_numbers<[1], [0], [0], [1], [0, 0, 1, 1], [], []>} : vector<8x72xbf16>, vector<72x384xbf16>, vector<8x384xf32> -> vector<8x384xf32>
    %c0_21 = arith.constant 0 : index
    %c0_22 = arith.constant 0 : index
    %36 = vector.load %arg6[%c0_21, %c0_22] : memref<8x1xf32, #tpu.memory_space<vmem>>, vector<8x1xf32>
    %37 = vector.broadcast %36 : vector<8x1xf32> to vector<8x384xf32>
    %38 = arith.mulf %35, %37 : vector<8x384xf32>
    %c0_23 = arith.constant 0 : index
    %c0_24 = arith.constant 0 : index
    %39 = vector.load %arg7[%c0_23, %c0_24] : memref<8x1xf32, #tpu.memory_space<vmem>>, vector<8x1xf32>
    %40 = vector.broadcast %39 : vector<8x1xf32> to vector<8x384xf32>
    %41 = arith.addf %38, %40 : vector<8x384xf32>
    %c0_25 = arith.constant 0 : index
    %c0_26 = arith.constant 0 : index
    %42 = vector.load %arg1[%c0_25, %c0_26] : memref<8x384xf32, #tpu.memory_space<vmem>>, vector<8x384xf32>
    %43 = arith.addf %41, %42 : vector<8x384xf32>
    %cst_27 = arith.constant 0.000000e+00 : f32
    %44 = vector.broadcast %cst_27 : f32 to vector<8x384xf32>
    %45 = arith.maximumf %43, %44 : vector<8x384xf32>
    %c0_28 = arith.constant 0 : index
    %c0_29 = arith.constant 0 : index
    %46 = vector.load %arg9[%c0_28, %c0_29] : memref<8x384xf32, #tpu.memory_space<vmem>>, vector<8x384xf32>
    tpu.vector_store %arg9[%c0_28, %c0_29], %45 {strides = array<i32>} : memref<8x384xf32, #tpu.memory_space<vmem>>, vector<8x384xf32>,
    return
  }
  func.func @transform_0(%arg0: i32) -> (i32, i32) {
    %c0_i32 = arith.constant 0 : i32
    %c0_i32_0 = arith.constant 0 : i32
    return %c0_i32, %arg0 : i32, i32
  }
  func.func @transform_1(%arg0: i32) -> (i32, i32) {
    %c0_i32 = arith.constant 0 : i32
    %c0_i32_0 = arith.constant 0 : i32
    %c0_i32_1 = arith.constant 0 : i32
    return %c0_i32, %c0_i32_0 : i32, i32
  }
  func.func @transform_2(%arg0: i32) -> (i32, i32) {
    %c0_i32 = arith.constant 0 : i32
    %c0_i32_0 = arith.constant 0 : i32
    %c0_i32_1 = arith.constant 0 : i32
    return %c0_i32, %c0_i32_0 : i32, i32
  }
  func.func @transform_3(%arg0: i32) -> (i32, i32) {
    %c0_i32 = arith.constant 0 : i32
    %c0_i32_0 = arith.constant 0 : i32
    %c0_i32_1 = arith.constant 0 : i32
    return %c0_i32, %c0_i32_0 : i32, i32
  }
  func.func @transform_4(%arg0: i32) -> (i32, i32) {
    %c0_i32 = arith.constant 0 : i32
    %c0_i32_0 = arith.constant 0 : i32
    %c0_i32_1 = arith.constant 0 : i32
    return %c0_i32, %c0_i32_0 : i32, i32
  }
  func.func @transform_5(%arg0: i32) -> (i32, i32) {
    %c0_i32 = arith.constant 0 : i32
    %c0_i32_0 = arith.constant 0 : i32
    %c0_i32_1 = arith.constant 0 : i32
    return %c0_i32, %c0_i32_0 : i32, i32
  }
  func.func @transform_6(%arg0: i32) -> (i32, i32) {
    %c0_i32 = arith.constant 0 : i32
    %c0_i32_0 = arith.constant 0 : i32
    %c0_i32_1 = arith.constant 0 : i32
    return %c0_i32, %c0_i32_0 : i32, i32
  }
  func.func @transform_7(%arg0: i32) -> (i32, i32) {
    %c0_i32 = arith.constant 0 : i32
    %c0_i32_0 = arith.constant 0 : i32
    %c0_i32_1 = arith.constant 0 : i32
    return %c0_i32, %c0_i32_0 : i32, i32
  }
  func.func @transform_8(%arg0: i32) -> (i32, i32) {
    %c0_i32 = arith.constant 0 : i32
    %c0_i32_0 = arith.constant 0 : i32
    return %c0_i32, %arg0 : i32, i32
  }
}

</mosaic_0001>

<bundles_post_ra>
// kernel: tpu_custom_call.1
= control target key start
LH: loop header
LB: loop body
LE: loop exit
PB: predicated region body
PF: predicated region fallthrough
CT: control target
= control target key end

     0   :  { %13 = vsyncpa [#allocation3], 0  ;;  %s837_s0 = inlined_call_operand.hbm [shape: f32[8,384], index: 0, kind: input, shape index: {}]   ;;  %s838_s1 = inlined_call_operand.vmem [shape: bf16[8,72], index: 1, kind: input, shape index: {}]   ;;  %s839_s2 = inlined_call_operand.vmem [shape: bf16[8,72], index: 2, kind: input, shape index: {}]   ;;  %s840_s3 = inlined_call_operand.vmem [shape: f32[8,1], index: 3, kind: input, shape index: {}]   ;;  %s841_s4 = inlined_call_operand.vmem [shape: f32[8,1], index: 4, kind: input, shape index: {}]   ;;  %s842_s5 = inlined_call_operand.vmem [shape: f32[8,1], index: 5, kind: input, shape index: {}]   ;;  %s843_s6 = inlined_call_operand.vmem [shape: f32[8,1], index: 6, kind: input, shape index: {}]   ;;  %s844_s7 = inlined_call_operand.vmem [shape: f32[1,384], index: 7, kind: input, shape index: {}]   ;;  %s845_s8 = inlined_call_operand.hbm [shape: f32[8,384], index: 8, kind: output, shape index: {}]  }
   0x1   :  { %14 = vsyncpa [#allocation4], 0  ;;  %s20_s29 = sshll.u32 %s837_s0, 4  ;;  %s566_s30 = smov [#allocation2]   ;;  %s21_s29 = int_to_ptr.hbm [resolvable:$true] %s20_s29 }
   0x2   :  { %s22_s9 = sshll.u32 %s566_s30, 4  ;;  %s23_s9 = int_to_ptr.vmem [resolvable:$true] %s22_s9 }
   0x3   :  { %25 = dma.hbm_to_vmem [thread:$0]  %s21_s29, 384, %s23_s9, [#allocation3]  }
   0x4   :  { %562 = dma.done.wait [#allocation3], 384  }
   0x5   :  { %563 = vsyncadd [#allocation3], 4294966912  ;;  %v625_v0 = vld [vmem:[#allocation2] sm:$0xff]  ;;  %v627_v1 = vld [vmem:[#allocation2 + $0x8] sm:$0xff]  ;;  %s567_s10 = smov 126   ;;  %s568_s11 = smov 124   ;;  %v54_v5 = vlaneseq }
   0x6   :  { %v436_v2 = vpack.i.bf16 %v627_v1, %v625_v0  ;;  %s569_s0 = smov 125   ;;  %v634_v3 = vld [vmem:[#allocation2 + $0x10] sm:$0xff]  ;;  %s570_s12 = smov 127   ;;  %vm150_vm3 = vcmask 1043456   ;;  %v199_v38 = vld [vmem:[%s840_s3] sm:$0xff]  ;;  %v575_v42 = vmov 0  }
   0x7   :  { %s571_s13 = smov 2   ;;  %s572_s14 = smov 1   ;;  %v657_v6 = vand.u32 127, %v54_v5  ;;  %v208_v39 = vld [vmem:[%s841_s4] sm:$0xff]  ;;  %471 = vset.pattern.permute.xlu1 %v575_v42  ;;  %472 = vset.pattern.permute.xlu2 %v575_v42  ;;  %vm146_vm9 = vcmask 588800  }
   0x8   :  { %437 = vrot.lane.b32.xlu1 %v436_v2, %s567_s10  ;;  %432 = vrot.lane.b32.xlu0 %v436_v2, %s568_s11  ;;  %s573_s15 = smov 4   ;;  %s574_s16 = smov 3  }
   0x9   :  { %442 = vrot.lane.b32.xlu2 %v436_v2, %s569_s0  ;;  %vm126_vm0 = vcmp.lt.s32.totalorder %v657_v6, 124  ;;  %vm116_vm1 = vcmp.lt.s32.totalorder %v657_v6, 125  ;;  %vm106_vm2 = vcmp.lt.s32.totalorder %v657_v6, 126  ;;  %vm96_vm4 = vcmp.lt.s32.totalorder %v657_v6, 127  ;;  %513 = vset.pattern.permute.xlu0 %v575_v42  ;;  %s404_s28 = sshll.u32 %s845_s8, 4  ;;  %s405_s28 = int_to_ptr.hbm [resolvable:$true] %s404_s28 }
   0xa   :  { %vm76_vm5 = vcmp.lt.s32.totalorder %v657_v6, 2  ;;  %vm86_vm6 = vcmp.lt.s32.totalorder %v657_v6, 1  ;;  %vm66_vm7 = vcmp.lt.s32.totalorder %v657_v6, 3  ;;  %vm56_vm8 = vcmp.lt.s32.totalorder %v657_v6, 4 }
  0x10   :  { %104 = vrot.lane.b32.xlu1 %v634_v3, %s567_s10  ;;  %124 = vrot.lane.b32.xlu0 %v634_v3, %s568_s11 }
  0x11   :  { %114 = vrot.lane.b32.xlu2 %v634_v3, %s569_s0 }
  0x18   :  { %94 = vrot.lane.b32.xlu1 %v634_v3, %s570_s12  ;;  %447 = vrot.lane.b32.xlu0 %v436_v2, %s570_s12 }
  0x19   :  { %452 = vrot.lane.b32.xlu2 %v436_v2, %s571_s13 }
  0x20   :  { %457 = vrot.lane.b32.xlu1 %v436_v2, %s572_s14  ;;  %74 = vrot.lane.b32.xlu0 %v634_v3, %s571_s13 }
  0x21   :  { %84 = vrot.lane.b32.xlu2 %v634_v3, %s572_s14 }
  0x28   :  { %462 = vrot.lane.b32.xlu0 %v436_v2, %s573_s15  ;;  %52 = vrot.lane.b32.xlu1 %v634_v3, %s573_s15 }
  0x29   :  { %467 = vrot.lane.b32.xlu2 %v436_v2, %s574_s16 }
  0x30   :  { %64 = vrot.lane.b32.xlu0 %v634_v3, %s574_s16  ;;  %202 = vperm.xlu1 %471, %v199_v38  }
  0x31   :  { %211 = vperm.xlu2 %472, %v208_v39  }
  0x63   :  { %v443_v4 = vpop.permute.xlu2 %442 }
  0x64   :  { %v445_v8 = vunpack.i.h.bf16 %v443_v4  ;;  %v444_v9 = vunpack.i.l.bf16 %v443_v4 }
  0x66   :  { %v118_v19 = vsel %vm116_vm1, %v444_v9, %v445_v8 }
  0x6b   :  { %v115_v7 = vpop.permute.xlu2 %114 }
  0x6c   :  { %v117_v29 = vsel %vm116_vm1, %v445_v8, %v115_v7  ;;  %v119_v30 = vsel %vm116_vm1, %v115_v7, %v444_v9 }
  0x73   :  { %v453_v20 = vpop.permute.xlu2 %452 }
  0x74   :  { %v455_v51 = vunpack.i.h.bf16 %v453_v20  ;;  %v454_v52 = vunpack.i.l.bf16 %v453_v20 }
  0x76   :  { %v78_v58 = vsel %vm76_vm5, %v454_v52, %v455_v51 }
  0x7a   :  { %v438_v10 = vpop.permute.xlu1 %437  ;;  %v433_v11 = vpop.permute.xlu0 %432 }
  0x7b   :  { %v440_v12 = vunpack.i.h.bf16 %v438_v10  ;;  %v439_v13 = vunpack.i.l.bf16 %v438_v10  ;;  %v435_v14 = vunpack.i.h.bf16 %v433_v11  ;;  %v434_v15 = vunpack.i.l.bf16 %v433_v11  ;;  %v85_v37 = vpop.permute.xlu2 %84 }
  0x7d   :  { %v128_v16 = vsel %vm126_vm0, %v434_v15, %v435_v14  ;;  %v108_v18 = vsel %vm106_vm2, %v439_v13, %v440_v12 }
  0x7e   :  { %v142_v17 = vpack.c.bf16 %v128_v16, %v128_v16  ;;  %v139_v22 = vpack.c.bf16 %v118_v19, %v108_v18  ;;  %v145_v16 = vld [vmem:[%s838_s1] sm:$0xf] }
  0x80   :  { %v152_v21 = vsel %vm150_vm3, %v142_v17, 0 }
  0x81   :  { %163 = vmatpush.bf16.msra.mxu0 %v152_v21 }
  0x82   :  { %v105_v23 = vpop.permute.xlu1 %104  ;;  %v125_v24 = vpop.permute.xlu0 %124 }
  0x83   :  { %v127_v25 = vsel %vm126_vm0, %v435_v14, %v125_v24  ;;  %v129_v26 = vsel %vm126_vm0, %v125_v24, %v434_v15  ;;  %v107_v31 = vsel %vm106_vm2, %v440_v12, %v105_v23  ;;  %v109_v32 = vsel %vm106_vm2, %v105_v23, %v439_v13  ;;  %v468_v59 = vpop.permute.xlu2 %467 }
  0x84   :  { %v143_v27 = vpack.c.bf16 %v127_v25, %v127_v25  ;;  %v144_v28 = vpack.c.bf16 %v129_v26, %v129_v26  ;;  %v140_v35 = vpack.c.bf16 %v117_v29, %v107_v31  ;;  %v141_v36 = vpack.c.bf16 %v119_v30, %v109_v32  ;;  %v220_v29 = vld [vmem:[%s844_s7] sm:$0x7] }
  0x85   :  { %164 = vmatpush.bf16.msra.mxu0 %v139_v22  ;;  %v470_v7 = vunpack.i.h.bf16 %v468_v59  ;;  %v469_v8 = vunpack.i.l.bf16 %v468_v59  ;;  %v223_v32 = vperm.slane %v220_v29, 1 }
  0x86   :  { %v155_v33 = vsel %vm150_vm3, %v143_v27, 0  ;;  %v158_v34 = vsel %vm150_vm3, %v144_v28, 0 }
  0x87   :  { %176 = vmatpush.bf16.msra.mxu1 %v155_v33  ;;  %189 = vmatpush.bf16.msra.mxu2 %v158_v34  ;;  %v68_v12 = vsel %vm66_vm7, %v469_v8, %v470_v7 }
  0x8a   :  { %v95_v40 = vpop.permute.xlu1 %94  ;;  %v448_v41 = vpop.permute.xlu0 %447 }
  0x8b   :  { %v450_v43 = vunpack.i.h.bf16 %v448_v41  ;;  %v449_v44 = vunpack.i.l.bf16 %v448_v41  ;;  %177 = vmatpush.bf16.msra.mxu1 %v140_v35  ;;  %190 = vmatpush.bf16.msra.mxu2 %v141_v36  ;;  %v212_v26 = vpop.permute.xlu2 %211  ;;  %v222_v35 = vperm.slane %v220_v29, 0 }
  0x8d   :  { %v98_v45 = vsel %vm96_vm4, %v449_v44, %v450_v43  ;;  %v97_v46 = vsel %vm96_vm4, %v450_v43, %v95_v40  ;;  %v99_v47 = vsel %vm96_vm4, %v95_v40, %v449_v44 }
  0x8e   :  { %v136_v48 = vpack.c.bf16 %v98_v45, %v625_v0  ;;  %v137_v49 = vpack.c.bf16 %v97_v46, %v627_v1  ;;  %v138_v50 = vpack.c.bf16 %v99_v47, %v634_v3  ;;  %v224_v46 = vperm.slane %v220_v29, 2 }
  0x90   :  { %165 = vmatpush.bf16.msra.mxu0 %v136_v48  ;;  %178 = vmatpush.bf16.msra.mxu1 %v137_v49 }
  0x91   :  { %191 = vmatpush.bf16.msra.mxu2 %v138_v50  ;;  %v379_v50 = vld [vmem:[%s843_s6] sm:$0xff] }
  0x92   :  { %v458_v53 = vpop.permute.xlu1 %457  ;;  %v75_v54 = vpop.permute.xlu0 %74 }
  0x93   :  { %v460_v55 = vunpack.i.h.bf16 %v458_v53  ;;  %v459_v56 = vunpack.i.l.bf16 %v458_v53  ;;  %v77_v57 = vsel %vm76_vm5, %v455_v51, %v75_v54  ;;  %v79_v60 = vsel %vm76_vm5, %v75_v54, %v454_v52  ;;  %v370_v51 = vld [vmem:[%s842_s5] sm:$0xff] }
  0x95   :  { %v89_v61 = vsel %vm86_vm6, %v85_v37, %v459_v56  ;;  %v88_v62 = vsel %vm86_vm6, %v459_v56, %v460_v55  ;;  %v87_v63 = vsel %vm86_vm6, %v460_v55, %v85_v37 }
  0x96   :  { %v133_v2 = vpack.c.bf16 %v89_v61, %v79_v60  ;;  %v134_v4 = vpack.c.bf16 %v88_v62, %v78_v58  ;;  %v135_v5 = vpack.c.bf16 %v87_v63, %v77_v57 }
  0x98   :  { %166 = vmatpush.bf16.msra.mxu0 %v133_v2  ;;  %179 = vmatpush.bf16.msra.mxu1 %v134_v4 }
  0x99   :  { %192 = vmatpush.bf16.msra.mxu2 %v135_v5 }
  0x9a   :  { %v463_v9 = vpop.permute.xlu0 %462  ;;  %v53_v15 = vpop.permute.xlu1 %52 }
  0x9b   :  { %v465_v10 = vunpack.i.h.bf16 %v463_v9  ;;  %v464_v11 = vunpack.i.l.bf16 %v463_v9 }
  0x9d   :  { %v58_v13 = vsel %vm56_vm8, %v464_v11, %v465_v10  ;;  %v57_v18 = vsel %vm56_vm8, %v465_v10, %v53_v15  ;;  %v59_v19 = vsel %vm56_vm8, %v53_v15, %v464_v11 }
  0x9e   :  { %v131_v14 = vpack.c.bf16 %v68_v12, %v58_v13 }
  0xa0   :  { %180 = vmatpush.bf16.msra.mxu1 %v131_v14 }
  0xa2   :  { %v65_v17 = vpop.permute.xlu0 %64  ;;  %v203_v24 = vpop.permute.xlu1 %202 }
  0xa3   :  { %v67_v20 = vsel %vm66_vm7, %v470_v7, %v65_v17  ;;  %v69_v21 = vsel %vm66_vm7, %v65_v17, %v469_v8  ;;  %415 = vmatmul.msk.bf16.vlgmr.msra.gmra.mxu1 %vm146_vm9, %v145_v16 }
  0xa4   :  { %v130_v22 = vpack.c.bf16 %v69_v21, %v59_v19  ;;  %v132_v23 = vpack.c.bf16 %v67_v20, %v57_v18 }
  0xa6   :  { %167 = vmatpush.bf16.msra.mxu0 %v130_v22  ;;  %193 = vmatpush.bf16.msra.mxu2 %v132_v23 }
  0xa9   :  { %414 = vmatmul.msk.bf16.vlgmr.msra.gmra.mxu0 %vm146_vm9, %v145_v16  ;;  %416 = vmatmul.msk.bf16.vlgmr.msra.gmra.mxu2 %vm146_vm9, %v145_v16 }
 0x120   :  { %v182_v25 = vpop.f32.mrf.mxu1 }
 0x121   :  { %v206_v27 = vmul.f32 %v203_v24, %v182_v25 }
 0x123   :  { %v215_v28 = vadd.f32 %v212_v26, %v206_v27 }
 0x125   :  { %v218_v33 = vmax.f32 %v215_v28, 0.0 }
 0x126   :  { %v169_v30 = vpop.f32.mrf.mxu0 }
 0x127   :  { %v205_v31 = vmul.f32 %v203_v24, %v169_v30  ;;  %v736_v38 = vmul.f32 %v223_v32, %v218_v33 }
 0x128   :  { %v184_v34 = vpop.f32.mrf.mxu1 }
 0x129   :  { %v214_v36 = vadd.f32 %v212_v26, %v205_v31 }
 0x12b   :  { %v217_v37 = vmax.f32 %v214_v36, 0.0 }
 0x12c   :  { %v195_v39 = vpop.f32.mrf.mxu2 }
 0x12d   :  { %v228_v40 = vmul.f32 %v222_v35, %v217_v37  ;;  %v207_v41 = vmul.f32 %v203_v24, %v195_v39 }
 0x12e   :  { %v171_v42 = vpop.f32.mrf.mxu0 }
 0x12f   :  { %v216_v43 = vadd.f32 %v212_v26, %v207_v41  ;;  %v483_v44 = vpack.i.bf16 %v736_v38, %v228_v40 }
 0x131   :  { %484 = vrot.lane.b32.xlu2 %v483_v44, %s569_s0  ;;  %479 = vrot.lane.b32.xlu1 %v483_v44, %s567_s10  ;;  %v219_v45 = vmax.f32 %v216_v43, 0.0 }
 0x132   :  { %474 = vrot.lane.b32.xlu0 %v483_v44, %s568_s11 }
 0x133   :  { %v742_v48 = vmul.f32 %v224_v46, %v219_v45 }
 0x134   :  { %v197_v47 = vpop.f32.mrf.mxu2 }
 0x135   :  { %v498_v49 = vpack.i.bf16 %v742_v48, %v228_v40  ;;  %v318_v47 = vld [vmem:[%s839_s2] sm:$0xf]  ;;  %s576_s2 = smov [#allocation5]  }
 0x136   :  { %s402_s25 = sshll.u32 %s576_s2, 4  ;;  %s403_s25 = int_to_ptr.vmem [resolvable:$true] %s402_s25 }
 0x139   :  { %280 = vrot.lane.b32.xlu2 %v742_v48, %s567_s10  ;;  %489 = vrot.lane.b32.xlu1 %v483_v44, %s570_s12 }
 0x13a   :  { %251 = vrot.lane.b32.xlu0 %v736_v38, %s571_s13 }
 0x141   :  { %499 = vrot.lane.b32.xlu2 %v498_v49, %s572_s14  ;;  %494 = vrot.lane.b32.xlu1 %v498_v49, %s571_s13 }
 0x142   :  { %298 = vrot.lane.b32.xlu0 %v742_v48, %s568_s11 }
 0x149   :  { %509 = vrot.lane.b32.xlu2 %v498_v49, %s574_s16  ;;  %504 = vrot.lane.b32.xlu1 %v498_v49, %s573_s15 }
 0x14a   :  { %289 = vrot.lane.b32.xlu0 %v742_v48, %s569_s0 }
 0x151   :  { %233 = vrot.lane.b32.xlu2 %v736_v38, %s573_s15  ;;  %260 = vrot.lane.b32.xlu1 %v736_v38, %s572_s14 }
 0x152   :  { %271 = vrot.lane.b32.xlu0 %v742_v48, %s570_s12 }
 0x159   :  { %382 = vperm.xlu2 %472, %v379_v50   ;;  %373 = vperm.xlu1 %471, %v370_v51  }
 0x15a   :  { %242 = vrot.lane.b32.xlu0 %v736_v38, %s574_s16 }
 0x18b   :  { %v485_v52 = vpop.permute.xlu2 %484 }
 0x18c   :  { %v487_v61 = vunpack.i.h.bf16 %v485_v52  ;;  %v486_v62 = vunpack.i.l.bf16 %v485_v52 }
 0x18e   :  { %v292_v10 = vsel %vm116_vm1, %v486_v62, %v487_v61 }
 0x193   :  { %v281_v53 = vpop.permute.xlu2 %280 }
 0x19b   :  { %v500_v11 = vpop.permute.xlu2 %499 }
 0x19c   :  { %v502_v15 = vunpack.i.h.bf16 %v500_v11  ;;  %v501_v16 = vunpack.i.l.bf16 %v500_v11 }
 0x19e   :  { %v266_v26 = vsel %vm86_vm6, %v502_v15, %v501_v16 }
 0x1a3   :  { %v480_v54 = vpop.permute.xlu1 %479  ;;  %v510_v27 = vpop.permute.xlu2 %509 }
 0x1a4   :  { %v475_v55 = vpop.permute.xlu0 %474  ;;  %v482_v58 = vunpack.i.h.bf16 %v480_v54  ;;  %v481_v59 = vunpack.i.l.bf16 %v480_v54  ;;  %v512_v31 = vunpack.i.h.bf16 %v510_v27  ;;  %v511_v32 = vunpack.i.l.bf16 %v510_v27 }
 0x1a5   :  { %v477_v56 = vunpack.i.h.bf16 %v475_v55  ;;  %v476_v57 = vunpack.i.l.bf16 %v475_v55 }
 0x1a6   :  { %v283_v4 = vsel %vm106_vm2, %v481_v59, %v482_v58  ;;  %v284_v41 = vsel %vm106_vm2, %v281_v53, %v481_v59  ;;  %v248_v45 = vsel %vm66_vm7, %v512_v31, %v511_v32 }
 0x1a7   :  { %v301_v60 = vsel %vm126_vm0, %v476_v57, %v477_v56  ;;  %v312_v12 = vpack.c.bf16 %v292_v10, %v283_v4 }
 0x1a8   :  { %v315_v63 = vpack.c.bf16 %v301_v60, %v301_v60 }
 0x1aa   :  { %v323_v2 = vsel %vm150_vm3, %v315_v63, 0 }
 0x1ab   :  { %334 = vmatpush.bf16.msra.mxu3 %v323_v2  ;;  %v490_v5 = vpop.permute.xlu1 %489 }
 0x1ac   :  { %v492_v7 = vunpack.i.h.bf16 %v490_v5  ;;  %v491_v8 = vunpack.i.l.bf16 %v490_v5  ;;  %v252_v9 = vpop.permute.xlu0 %251 }
 0x1ae   :  { %v274_v13 = vsel %vm96_vm4, %v491_v8, %v492_v7 }
 0x1af   :  { %335 = vmatpush.bf16.msra.mxu3 %v312_v12  ;;  %v309_v14 = vpack.c.bf16 %v274_v13, %v228_v40  ;;  %v282_v40 = vsel %vm106_vm2, %v482_v58, %v281_v53 }
 0x1b3   :  { %336 = vmatpush.bf16.msra.mxu3 %v309_v14  ;;  %v495_v17 = vpop.permute.xlu1 %494 }
 0x1b4   :  { %v497_v18 = vunpack.i.h.bf16 %v495_v17  ;;  %v496_v19 = vunpack.i.l.bf16 %v495_v17  ;;  %v299_v20 = vpop.permute.xlu0 %298 }
 0x1b5   :  { %v300_v21 = vsel %vm126_vm0, %v477_v56, %v299_v20  ;;  %v302_v22 = vsel %vm126_vm0, %v299_v20, %v476_v57 }
 0x1b6   :  { %v316_v23 = vpack.c.bf16 %v300_v21, %v300_v21  ;;  %v317_v24 = vpack.c.bf16 %v302_v22, %v302_v22  ;;  %v257_v25 = vsel %vm76_vm5, %v497_v18, %v496_v19  ;;  %v256_v57 = vsel %vm76_vm5, %v496_v19, %v252_v9 }
 0x1b7   :  { %v306_v28 = vpack.c.bf16 %v266_v26, %v257_v25  ;;  %v255_v58 = vsel %vm76_vm5, %v252_v9, %v497_v18 }
 0x1b8   :  { %v326_v29 = vsel %vm150_vm3, %v316_v23, 0  ;;  %v329_v30 = vsel %vm150_vm3, %v317_v24, 0 }
 0x1b9   :  { %347 = vmatpush.bf16.msrb.mxu0 %v326_v29  ;;  %360 = vmatpush.bf16.msrb.mxu1 %v329_v30 }
 0x1ba   :  { %337 = vmatpush.bf16.msra.mxu3 %v306_v28 }
 0x1bb   :  { %v505_v33 = vpop.permute.xlu1 %504 }
 0x1bc   :  { %v507_v34 = vunpack.i.h.bf16 %v505_v33  ;;  %v506_v35 = vunpack.i.l.bf16 %v505_v33  ;;  %v290_v36 = vpop.permute.xlu0 %289 }
 0x1bd   :  { %v291_v37 = vsel %vm116_vm1, %v487_v61, %v290_v36  ;;  %v293_v39 = vsel %vm116_vm1, %v290_v36, %v486_v62  ;;  %v234_v61 = vpop.permute.xlu2 %233 }
 0x1be   :  { %v313_v42 = vpack.c.bf16 %v291_v37, %v282_v40  ;;  %v314_v43 = vpack.c.bf16 %v293_v39, %v284_v41  ;;  %v239_v44 = vsel %vm56_vm8, %v507_v34, %v506_v35  ;;  %v238_v63 = vsel %vm56_vm8, %v506_v35, %v234_v61 }
 0x1bf   :  { %v303_v46 = vpack.c.bf16 %v248_v45, %v239_v44  ;;  %v237_v2 = vsel %vm56_vm8, %v234_v61, %v507_v34 }
 0x1c0   :  { %348 = vmatpush.bf16.msrb.mxu0 %v313_v42  ;;  %361 = vmatpush.bf16.msrb.mxu1 %v314_v43 }
 0x1c1   :  { %338 = vmatpush.bf16.msra.mxu3 %v303_v46 }
 0x1c3   :  { %v261_v49 = vpop.permute.xlu1 %260 }
 0x1c4   :  { %v272_v50 = vpop.permute.xlu0 %271  ;;  %417 = vmatmul.msk.bf16.vlgmr.msra.gmra.mxu3 %vm146_vm9, %v318_v47  ;;  %v264_v55 = vsel %vm86_vm6, %v261_v49, %v502_v15  ;;  %v265_v56 = vsel %vm86_vm6, %v501_v16, %v261_v49 }
 0x1c5   :  { %v273_v51 = vsel %vm96_vm4, %v492_v7, %v272_v50  ;;  %v275_v52 = vsel %vm96_vm4, %v272_v50, %v491_v8  ;;  %v307_v59 = vpack.c.bf16 %v265_v56, %v256_v57  ;;  %v308_v60 = vpack.c.bf16 %v264_v55, %v255_v58  ;;  %v383_v10 = vpop.permute.xlu2 %382 }
 0x1c6   :  { %v310_v53 = vpack.c.bf16 %v273_v51, %v736_v38  ;;  %v311_v54 = vpack.c.bf16 %v275_v52, %v742_v48 }
 0x1c8   :  { %349 = vmatpush.bf16.msrb.mxu0 %v310_v53  ;;  %362 = vmatpush.bf16.msrb.mxu1 %v311_v54 }
 0x1cb   :  { %v374_v7 = vpop.permute.xlu1 %373 }
 0x1cc   :  { %v243_v38 = vpop.permute.xlu0 %242  ;;  %350 = vmatpush.bf16.msrb.mxu0 %v307_v59  ;;  %363 = vmatpush.bf16.msrb.mxu1 %v308_v60 }
 0x1cd   :  { %v246_v48 = vsel %vm66_vm7, %v243_v38, %v512_v31  ;;  %v247_v62 = vsel %vm66_vm7, %v511_v32, %v243_v38 }
 0x1ce   :  { %v304_v4 = vpack.c.bf16 %v247_v62, %v238_v63  ;;  %v305_v5 = vpack.c.bf16 %v246_v48, %v237_v2 }
 0x1d0   :  { %351 = vmatpush.bf16.msrb.mxu0 %v304_v4  ;;  %364 = vmatpush.bf16.msrb.mxu1 %v305_v5 }
 0x1d3   :  { %418 = vmatmul.msk.bf16.vlgmr.msrb.gmra.mxu0 %vm146_vm9, %v318_v47  ;;  %419 = vmatmul.msk.bf16.vlgmr.msrb.gmra.mxu1 %vm146_vm9, %v318_v47 }
 0x247   :  { %v340_v8 = vpop.f32.mrf.mxu3 }
 0x248   :  { %v376_v9 = vmul.f32 %v374_v7, %v340_v8 }
 0x24a   :  { %v385_v11 = vadd.f32 %v383_v10, %v376_v9 }
 0x24c   :  { %v388_v12 = vadd.f32 %v385_v11, %v625_v0 }
 0x24e   :  { %v391_v13 = vmax.f32 %v388_v12, 0.0 }
 0x24f   :  { %v342_v14 = vpop.f32.mrf.mxu3 }
 0x250   :  { %394 = vst [vmem:[#allocation5] sm:$0xff] %v391_v13  ;;  %v353_v6 = vpop.f32.mrf.mxu0  ;;  %v366_v15 = vpop.f32.mrf.mxu1 }
 0x251   :  { %v377_v16 = vmul.f32 %v374_v7, %v353_v6  ;;  %v378_v17 = vmul.f32 %v374_v7, %v366_v15 }
 0x253   :  { %v386_v18 = vadd.f32 %v383_v10, %v377_v16  ;;  %v387_v19 = vadd.f32 %v383_v10, %v378_v17 }
 0x255   :  { %v389_v20 = vadd.f32 %v386_v18, %v627_v1  ;;  %v390_v21 = vadd.f32 %v387_v19, %v634_v3 }
 0x257   :  { %v392_v0 = vmax.f32 %v389_v20, 0.0  ;;  %v393_v22 = vmax.f32 %v390_v21, 0.0 }
 0x258   :  { %v355_v23 = vpop.f32.mrf.mxu0  ;;  %v368_v24 = vpop.f32.mrf.mxu1 }
 0x259   :  { %395 = vst [vmem:[#allocation5 + $0x8] sm:$0xff] %v392_v0 }
 0x25a   :  { %396 = vst [vmem:[#allocation5 + $0x10] sm:$0xff] %v393_v22 }
 0x25b   :  { %407 = dma.vmem_to_hbm [thread:$0]  %s403_s25, 384, %s405_s28, [#allocation4]  }
 0x25c   :  { %564 = dma.done.wait [#allocation4], 384  }
 0x25d   :  { %565 = vsyncadd [#allocation4], 4294966912 }
 0x25e   :  { %412 = vsyncpa [#allocation3], 1 }
 0x25f   :  { %413 = vsyncpa [#allocation4], 1 }

</bundles_post_ra>
